<compile_context>
chip_gen: v7x
topology: tpu7x:2x2x1
jax: 0.10.0
libtpu: 0.0.40
codegen_flags: <defaults>
</compile_context>

<pallas_src>
import functools

import jax
import jax.numpy as jnp
from jax.experimental import pallas as pl
from jax.experimental.pallas import tpu as pltpu

EPS = 1e-5                          # torch BatchNorm2d default eps
TM_MAX, TN_MAX, TK_MAX = 512, 256, 512   # MXU tile caps (256-wide N for v6e/v7x)
EW_ROW_TILES = (1024, 512)          # row-tile candidates for the elementwise pass
VMEM_LIMIT = 32 * 1024 * 1024       # safe on v5e (128MiB), v6e (128MiB), v7x (64MiB)
MXU_DTYPE = jnp.bfloat16            # bf16 MXU inputs, f32 accumulate + f32 BN stats
Y_DTYPE = jnp.bfloat16              # conv output stored bf16 (read twice downstream)


def _round_up(x, m):
    return ((x + m - 1) // m) * m


def _pad_and_tile(dim, max_tile, align):
    """(padded_dim, tile) with padded_dim % tile == 0; tile is either the full
    padded dim (small problems -> no dead grid steps) or the hardware cap."""
    if dim <= max_tile:
        p = _round_up(dim, align)
        return p, p
    p = _round_up(dim, max_tile)
    return p, max_tile


def _ew_row_tile(mp):
    for t in EW_ROW_TILES:
        if mp % t == 0:
            return t
    return mp


# --------------------------- Pallas kernels ---------------------------------

def _matmul_bn_stats_kernel(a_ref, b_ref, y_ref, s1_ref, s2_ref, acc_ref, *, tk, nk):
    """Tiled matmul (bf16 in, f32 accumulate).  B is VMEM-resident (full K);
    the K grid axis slices it in-kernel.  On the last K step it writes the
    lane-dense bf16 output tile plus f32 per-channel partial sum / sum-of-
    squares (fused BatchNorm-statistics epilogue)."""
    k = pl.program_id(2)

    @pl.when(k == 0)
    def _init():
        acc_ref[...] = jnp.zeros_like(acc_ref)

    if nk == 1:
        b_tile = b_ref[...]
    else:
        start = pl.multiple_of(k * tk, tk)
        b_tile = b_ref[pl.ds(start, tk), :]

    acc_ref[...] += jnp.dot(a_ref[...], b_tile,
                            preferred_element_type=jnp.float32)

    @pl.when(k == nk - 1)
    def _finalize():
        acc = acc_ref[...]
        y_ref[...] = acc.astype(y_ref.dtype)
        s1_ref[...] = jnp.sum(acc, axis=0, keepdims=True)[None]
        s2_ref[...] = jnp.sum(acc * acc, axis=0, keepdims=True)[None]


def pallas_conv_matmul(a, b):
    """a: (M, K) im2col matrix, b: (K, Cout) reshaped conv weights.
    Returns y_pad (Mp, Np) bf16 plus per-row-block f32 partial BN stats."""
    M, K = a.shape
    Cout = b.shape[1]
    Mp, TM = _pad_and_tile(M, TM_MAX, 16)      # 16: bf16 sublane quantum
    Kp, TK = _pad_and_tile(K, TK_MAX, 128)
    Np, TN = _pad_and_tile(Cout, TN_MAX, 128)
    a_p = jnp.pad(a, ((0, Mp - M), (0, Kp - K))).astype(MXU_DTYPE)
    b_p = jnp.pad(b, ((0, Kp - K), (0, Np - Cout))).astype(MXU_DTYPE)
    gm, gn, gk = Mp // TM, Np // TN, Kp // TK
    esize = jnp.dtype(MXU_DTYPE).itemsize
    ysize = jnp.dtype(Y_DTYPE).itemsize
    cost = pl.CostEstimate(
        flops=2 * Mp * Np * Kp,
        transcendentals=0,
        bytes_accessed=esize * (Mp * Kp + gn * Kp * Np)
        + ysize * Mp * Np + 4 * 2 * gm * Np)
    kernel = functools.partial(_matmul_bn_stats_kernel, tk=TK, nk=gk)
    return pl.pallas_call(
        kernel,
        out_shape=(jax.ShapeDtypeStruct((Mp, Np), Y_DTYPE),
                   jax.ShapeDtypeStruct((gm, 1, Np), jnp.float32),
                   jax.ShapeDtypeStruct((gm, 1, Np), jnp.float32)),
        grid=(gm, gn, gk),
        in_specs=[pl.BlockSpec((TM, TK), lambda i, j, k: (i, k)),
                  # weights: full-K block, k/i-invariant -> stays resident in VMEM
                  pl.BlockSpec((Kp, TN), lambda i, j, k: (0, j))],
        out_specs=(pl.BlockSpec((TM, TN), lambda i, j, k: (i, j)),
                   pl.BlockSpec((1, 1, TN), lambda i, j, k: (i, 0, j)),
                   pl.BlockSpec((1, 1, TN), lambda i, j, k: (i, 0, j))),
        scratch_shapes=[pltpu.VMEM((TM, TN), jnp.float32)],
        compiler_params=pltpu.CompilerParams(
            dimension_semantics=("parallel", "parallel", "arbitrary"),
            vmem_limit_bytes=VMEM_LIMIT),
        cost_estimate=cost,
    )(a_p, b_p)


def _bn_act_compute(kappa_ref, lam_ref, y_ref, scale_ref, bias_ref, h_ref,
                    resid, o_ref):
    kappa = kappa_ref[0]
    lam = lam_ref[0]
    # BatchNorm apply (affine folded into per-channel scale/bias) + residual.
    z = y_ref[...].astype(jnp.float32) * scale_ref[...] + bias_ref[...]
    if resid is not None:
        z = z + resid
    # APA: (lam*exp(-kappa*z) + 1) ** (-1/lam).  Requires lam > 0 (module init
    # lam = 1); for lam <= 0 PyTorch's pow would itself produce NaN.
    # TODO(synk): lam==1 fast path (logistic via pl.reciprocal(approx=True))
    #             cuts EUP work from exp+log+exp to one exp (matters on v5e).
    neg_inv_lam = -1.0 / lam
    base = lam * jnp.exp(-kappa * z) + 1.0
    apa = jnp.exp(neg_inv_lam * jnp.log(base))
    # Hinge sum.  Each term uses distinct per-row data; loop is static & tiny.
    h = h_ref[...]
    pw = jnp.zeros_like(z)
    for t in range(h.shape[1]):
        pw = pw + jnp.maximum(z - h[:, t:t + 1], 0.0)
    o_ref[...] = apa + pw


def _bn_act_kernel(kappa_ref, lam_ref, y_ref, scale_ref, bias_ref, h_ref, o_ref):
    _bn_act_compute(kappa_ref, lam_ref, y_ref, scale_ref, bias_ref, h_ref,
                    None, o_ref)


def _bn_act_res_kernel(kappa_ref, lam_ref, y_ref, scale_ref, bias_ref, h_ref,
                       r_ref, o_ref):
    _bn_act_compute(kappa_ref, lam_ref, y_ref, scale_ref, bias_ref, h_ref,
                    r_ref[...], o_ref)


def pallas_bn_act(y_pad, scale, bias, hinge_rows_pad, kappa, lam, resid_pad=None):
    """Fused BN-apply + (optional residual add) + HybridAPA on lane-dense,
    large-row-tile blocks (HBM-bound pass; big tiles amortize per-step cost)."""
    Mp, CP = y_pad.shape
    K = hinge_rows_pad.shape[1]
    TR = _ew_row_tile(Mp)
    in_specs = [pl.BlockSpec(memory_space=pltpu.MemorySpace.SMEM),   # kappa (1,)
                pl.BlockSpec(memory_space=pltpu.MemorySpace.SMEM),   # lambda (1,)
                pl.BlockSpec((TR, CP), lambda i: (i, 0)),            # conv out (bf16)
                pl.BlockSpec((1, CP), lambda i: (0, 0)),             # scale
                pl.BlockSpec((1, CP), lambda i: (0, 0)),             # bias
                pl.BlockSpec((TR, K), lambda i: (i, 0))]             # hinge rows
    args = [kappa, lam, y_pad, scale.reshape(1, CP), bias.reshape(1, CP),
            hinge_rows_pad]
    if resid_pad is None:
        kernel = _bn_act_kernel
    else:
        kernel = _bn_act_res_kernel
        in_specs.append(pl.BlockSpec((TR, CP), lambda i: (i, 0)))
        args.append(resid_pad)
    return pl.pallas_call(
        kernel,
        out_shape=jax.ShapeDtypeStruct((Mp, CP), jnp.float32),
        grid=(Mp // TR,),
        in_specs=in_specs,
        out_specs=pl.BlockSpec((TR, CP), lambda i: (i, 0)),
        compiler_params=pltpu.CompilerParams(
            dimension_semantics=("parallel",),
            vmem_limit_bytes=VMEM_LIMIT),
    )(*args)


# --------------------------- JAX glue ---------------------------------------

def im2col_3x3(x_nhwc):
    # 3x3 kernel, stride 1, pad 1 -> (N*H*W, 9*C), tap-major / channel-minor.
    N, H, W, C = x_nhwc.shape
    xp = jnp.pad(x_nhwc, ((0, 0), (1, 1), (1, 1), (0, 0)))
    cols = [xp[:, di:di + H, dj:dj + W, :] for di in range(3) for dj in range(3)]
    a = jnp.stack(cols, axis=3)                    # (N, H, W, 9, C)
    return a.reshape(N * H * W, 9 * C)


def conv3x3(x_nhwc, w):
    # w: (Cout, Cin, 3, 3); stride 1, pad 1, no bias (PyTorch Conv2d semantics).
    Cout, Cin = w.shape[0], w.shape[1]
    a = im2col_3x3(x_nhwc)                                      # (M, 9*Cin)
    b = jnp.transpose(w, (2, 3, 1, 0)).reshape(9 * Cin, Cout)   # tap-major rows
    return pallas_conv_matmul(a, b)


def bn_scale_bias(s1, s2, m_true, gamma, beta):
    """Fold training-mode BatchNorm (batch stats, biased variance, eps=1e-5)
    into per-channel scale/bias from the matmul-epilogue partial sums (all
    accumulated in f32 inside the MXU kernel; padded rows/channels are zero)."""
    cp = s1.shape[-1]
    tot = jnp.sum(s1, axis=(0, 1))
    totsq = jnp.sum(s2, axis=(0, 1))
    mean = tot / m_true
    var = jnp.maximum(totsq / m_true - mean * mean, 0.0)
    inv = jax.lax.rsqrt(var + EPS)
    g = jnp.pad(gamma, (0, cp - gamma.shape[0]))
    bt = jnp.pad(beta, (0, cp - beta.shape[0]))
    scale = g * inv
    bias = bt - mean * scale
    return scale, bias


def _dft2_ortho(x_nhwc):
    # Exact (re, im) of torch.fft.rfft2(x, norm='ortho') over the spatial dims
    # of an NHWC tensor, via explicit tiny DFT matrices (f32 internally).
    x = x_nhwc.astype(jnp.float32)
    N, H, W, C = x.shape
    Wf = W // 2 + 1
    aw = 2.0 * jnp.pi * jnp.outer(jnp.arange(W, dtype=jnp.float32),
                                  jnp.arange(Wf, dtype=jnp.float32)) / W
    ah = 2.0 * jnp.pi * jnp.outer(jnp.arange(H, dtype=jnp.float32),
                                  jnp.arange(H, dtype=jnp.float32)) / H
    cw, sw = jnp.cos(aw), jnp.sin(aw)
    ch, sh = jnp.cos(ah), jnp.sin(ah)
    y_re = jnp.einsum('nhwc,wk->nhkc', x, cw)
    y_im = -jnp.einsum('nhwc,wk->nhkc', x, sw)
    x_re = jnp.einsum('hm,nhkc->nmkc', ch, y_re) + jnp.einsum('hm,nhkc->nmkc', sh, y_im)
    x_im = jnp.einsum('hm,nhkc->nmkc', ch, y_im) - jnp.einsum('hm,nhkc->nmkc', sh, y_re)
    s = (H * W) ** -0.5
    return s * x_re, s * x_im                      # (N, H, Wf, C) each


def hinge_row_table(y_nhwc, resid_nhwc, scale_c, bias_c, act):
    """Per-row hinge values for the HybridAPA piecewise term.  The activation
    input is z = scale*y + bias (+ resid); its rfft2 follows by LINEARITY from
    the rfft2 of y (and of the residual): the constant per-channel bias only
    adds bias*sqrt(H*W) to the DC bin (ortho norm)."""
    N, H, W, C = y_nhwc.shape
    fy_re, fy_im = _dft2_ortho(y_nhwc)
    re = fy_re * scale_c
    im = fy_im * scale_c
    if resid_nhwc is not None:
        fr_re, fr_im = _dft2_ortho(resid_nhwc)
        re = re + fr_re
        im = im + fr_im
    re = re.at[:, 0, 0, :].add(bias_c * ((H * W) ** 0.5))
    mag = jnp.sqrt(re * re + im * im).mean(axis=(1, 2))         # (N, C)
    # 1 -> 16 -> 3 adapter MLP (PyTorch Linear semantics).
    h = jnp.maximum(mag[..., None] @ act['fc1_w'].T + act['fc1_b'], 0.0)
    hinges = jnp.squeeze(h @ act['fc2_w'].T + act['fc2_b'])     # torch .squeeze()
    # `for h in hinges` in torch iterates the leading axis; each term
    # broadcasts against x's trailing (H, W) dims (requires H == C, W == 3).
    terms = [jnp.broadcast_to(hinges[t], (H, W)) for t in range(hinges.shape[0])]
    hm = jnp.stack(terms, axis=-1)                              # (H, W, K)
    k = hm.shape[-1]
    return jnp.broadcast_to(hm[None], (N, H, W, k)).reshape(N * H * W, k)


def basic_block_forward(x, params):
    # x: (N, C, H, W).  stride=1, downsample=None (constructor defaults).
    N, C, H, W = x.shape
    M = N * H * W
    act = params['act']
    kappa, lam = act['kappa'], act['lambda_']

    x_nhwc = jnp.transpose(x, (0, 2, 3, 1))        # single layout change in
    ident = x_nhwc.reshape(M, C)                   # residual, channels-last

    # --- conv1 -> bn1 -> HybridAPA ------------------------------------------
    y1, s1a, s1b = conv3x3(x_nhwc, params['conv1_w'])
    Mp, CP = y1.shape
    sc1, bi1 = bn_scale_bias(s1a, s1b, M, params['bn1_gamma'], params['bn1_beta'])
    hr1 = hinge_row_table(y1[:M, :C].reshape(N, H, W, C), None,
                          sc1[:C], bi1[:C], act)
    hr1 = jnp.pad(hr1, ((0, Mp - M), (0, 0)))
    a1 = pallas_bn_act(y1, sc1, bi1, hr1, kappa, lam)           # fused BN+APA

    # --- conv2 -> bn2 -> (+ identity) -> HybridAPA --------------------------
    y2, s2a, s2b = conv3x3(a1[:M, :C].reshape(N, H, W, C), params['conv2_w'])
    sc2, bi2 = bn_scale_bias(s2a, s2b, M, params['bn2_gamma'], params['bn2_beta'])
    hr2 = hinge_row_table(y2[:M, :C].reshape(N, H, W, C), x_nhwc,
                          sc2[:C], bi2[:C], act)
    hr2 = jnp.pad(hr2, ((0, Mp - M), (0, 0)))
    ident_pad = jnp.pad(ident, ((0, Mp - M), (0, CP - C)))      # skip stays f32
    out = pallas_bn_act(y2, sc2, bi2, hr2, kappa, lam, resid_pad=ident_pad)

    out = out[:M, :C].reshape(N, H, W, C)
    return jnp.transpose(out, (0, 3, 1, 2))        # back to NCHW


def init_params(key, inplanes, planes):
    ks = jax.random.split(key, 6)
    return {
        'conv1_w': 0.1 * jax.random.normal(ks[0], (planes, inplanes, 3, 3), jnp.float32),
        'conv2_w': 0.1 * jax.random.normal(ks[1], (planes, planes, 3, 3), jnp.float32),
        'bn1_gamma': jnp.ones((planes,), jnp.float32),
        'bn1_beta': jnp.zeros((planes,), jnp.float32),
        'bn2_gamma': jnp.ones((planes,), jnp.float32),
        'bn2_beta': jnp.zeros((planes,), jnp.float32),
        'act': {
            'kappa': jnp.ones((1,), jnp.float32),      # nn.Parameter(torch.ones(1))
            'lambda_': jnp.ones((1,), jnp.float32),    # nn.Parameter(torch.ones(1))
            'fc1_w': 0.5 * jax.random.normal(ks[2], (16, 1), jnp.float32),
            'fc1_b': 0.1 * jax.random.normal(ks[3], (16,), jnp.float32),
            'fc2_w': 0.5 * jax.random.normal(ks[4], (3, 16), jnp.float32),
            'fc2_b': 0.1 * jax.random.normal(ks[5], (3,), jnp.float32),
        },
    }


if __name__ == "__main__":
    key = jax.random.PRNGKey(0)
    kx, kp = jax.random.split(key)
    # H == C and W == 3 is required by the hinge broadcast in the reference code.
    N, C, H, W = 2, 8, 8, 3
    x = jax.random.normal(kx, (N, C, H, W), jnp.float32)
    params = init_params(kp, inplanes=C, planes=C)

    out = jax.jit(basic_block_forward)(x, params)
    jax.block_until_ready(out)
    assert out.shape == (N, C, H, W) and out.dtype == jnp.float32
    assert bool(jnp.all(jnp.isfinite(out)))
    print("KERNEL_OK")
</pallas_src>

<mosaic_0001>
module attributes {stable_mosaic.version = 11 : i64} {
  func.func @_matmul_bn_stats_kernel(%arg0: i32, %arg1: i32, %arg2: i32, %arg3: memref<48x128xbf16, #tpu.memory_space<vmem>>, %arg4: memref<128x128xbf16, #tpu.memory_space<vmem>>, %arg5: memref<48x128xbf16, #tpu.memory_space<vmem>>, %arg6: memref<1x1x128xf32, #tpu.memory_space<vmem>>, %arg7: memref<1x1x128xf32, #tpu.memory_space<vmem>>, %arg8: memref<48x128xf32, #tpu.memory_space<vmem>>) attributes {dimension_semantics = [#tpu.dimension_semantics<parallel>, #tpu.dimension_semantics<parallel>, #tpu.dimension_semantics<arbitrary>], iteration_bounds = array<i64: 1, 1, 1>, scalar_prefetch = 0 : i64, scratch_operands = 1 : i64, tpu.core_type = #tpu.core_type<tc>, window_params = [{transform_indices = @transform_0, window_bounds = array<i64: 48, 128>}, {transform_indices = @transform_1, window_bounds = array<i64: 128, 128>}, {transform_indices = @transform_2, window_bounds = array<i64: 48, 128>}, {transform_indices = @transform_3, window_bounds = array<i64: 1, 1, 128>}, {transform_indices = @transform_4, window_bounds = array<i64: 1, 1, 128>}]} {
    %c0_i32 = arith.constant 0 : i32
    %0 = arith.cmpi eq, %arg2, %c0_i32 : i32
    %1 = arith.extui %0 : i1 to i32
    %c0_i32_0 = arith.constant 0 : i32
    %2 = arith.cmpi ne, %1, %c0_i32_0 : i32
    scf.if %2 {
      %cst_10 = arith.constant 0.000000e+00 : f32
      %12 = vector.broadcast %cst_10 : f32 to vector<48x128xf32>
      %c0_11 = arith.constant 0 : index
      %c0_12 = arith.constant 0 : index
      %13 = vector.load %arg8[%c0_11, %c0_12] : memref<48x128xf32, #tpu.memory_space<vmem>>, vector<48x128xf32>
      tpu.vector_store %arg8[%c0_11, %c0_12], %12 {strides = array<i32>} : memref<48x128xf32, #tpu.memory_space<vmem>>, vector<48x128xf32>,
    } else {
    }
    %c0 = arith.constant 0 : index
    %c0_1 = arith.constant 0 : index
    %3 = vector.load %arg4[%c0, %c0_1] : memref<128x128xbf16, #tpu.memory_space<vmem>>, vector<128x128xbf16>
    %c0_2 = arith.constant 0 : index
    %c0_3 = arith.constant 0 : index
    %4 = vector.load %arg8[%c0_2, %c0_3] : memref<48x128xf32, #tpu.memory_space<vmem>>, vector<48x128xf32>
    %c0_4 = arith.constant 0 : index
    %c0_5 = arith.constant 0 : index
    %5 = vector.load %arg3[%c0_4, %c0_5] : memref<48x128xbf16, #tpu.memory_space<vmem>>, vector<48x128xbf16>
    %cst = arith.constant dense<0.000000e+00> : vector<48x128xf32>
    %6 = tpu.matmul %5, %3, %cst {dimension_numbers = #tpu.dot_dimension_numbers<[1], [0], [0], [1], [0, 0, 1, 1], [], []>} : vector<48x128xbf16>, vector<128x128xbf16>, vector<48x128xf32> -> vector<48x128xf32>
    %7 = arith.addf %4, %6 : vector<48x128xf32>
    %c0_6 = arith.constant 0 : index
    %c0_7 = arith.constant 0 : index
    %8 = vector.load %arg8[%c0_6, %c0_7] : memref<48x128xf32, #tpu.memory_space<vmem>>, vector<48x128xf32>
    tpu.vector_store %arg8[%c0_6, %c0_7], %7 {strides = array<i32>} : memref<48x128xf32, #tpu.memory_space<vmem>>, vector<48x128xf32>,
    %c0_i32_8 = arith.constant 0 : i32
    %9 = arith.cmpi eq, %arg2, %c0_i32_8 : i32
    %10 = arith.extui %9 : i1 to i32
    %c0_i32_9 = arith.constant 0 : i32
    %11 = arith.cmpi ne, %10, %c0_i32_9 : i32
    scf.if %11 {
      %c0_10 = arith.constant 0 : index
      %c0_11 = arith.constant 0 : index
      %12 = vector.load %arg8[%c0_10, %c0_11] : memref<48x128xf32, #tpu.memory_space<vmem>>, vector<48x128xf32>
      %13 = arith.truncf %12 : vector<48x128xf32> to vector<48x128xbf16>
      %c0_12 = arith.constant 0 : index
      %c0_13 = arith.constant 0 : index
      %14 = vector.load %arg5[%c0_12, %c0_13] : memref<48x128xbf16, #tpu.memory_space<vmem>>, vector<48x128xbf16>
      tpu.vector_store %arg5[%c0_12, %c0_13], %13 {strides = array<i32>} : memref<48x128xbf16, #tpu.memory_space<vmem>>, vector<48x128xbf16>,
      %cst_14 = arith.constant dense<0.000000e+00> : vector<128xf32>
      %15 = vector.multi_reduction <add>, %12, %cst_14 [0] : vector<48x128xf32> to vector<128xf32>
      %16 = vector.shape_cast %15 : vector<128xf32> to vector<1x128xf32>
      %17 = vector.shape_cast %16 : vector<1x128xf32> to vector<1x1x128xf32>
      %c0_15 = arith.constant 0 : index
      %c0_16 = arith.constant 0 : index
      %c0_17 = arith.constant 0 : index
      %18 = vector.load %arg6[%c0_15, %c0_16, %c0_17] : memref<1x1x128xf32, #tpu.memory_space<vmem>>, vector<1x1x128xf32>
      tpu.vector_store %arg6[%c0_15, %c0_16, %c0_17], %17 {strides = array<i32>} : memref<1x1x128xf32, #tpu.memory_space<vmem>>, vector<1x1x128xf32>,
      %19 = arith.mulf %12, %12 : vector<48x128xf32>
      %cst_18 = arith.constant dense<0.000000e+00> : vector<128xf32>
      %20 = vector.multi_reduction <add>, %19, %cst_18 [0] : vector<48x128xf32> to vector<128xf32>
      %21 = vector.shape_cast %20 : vector<128xf32> to vector<1x128xf32>
      %22 = vector.shape_cast %21 : vector<1x128xf32> to vector<1x1x128xf32>
      %c0_19 = arith.constant 0 : index
      %c0_20 = arith.constant 0 : index
      %c0_21 = arith.constant 0 : index
      %23 = vector.load %arg7[%c0_19, %c0_20, %c0_21] : memref<1x1x128xf32, #tpu.memory_space<vmem>>, vector<1x1x128xf32>
      tpu.vector_store %arg7[%c0_19, %c0_20, %c0_21], %22 {strides = array<i32>} : memref<1x1x128xf32, #tpu.memory_space<vmem>>, vector<1x1x128xf32>,
    } else {
    }
    return
  }
  func.func @transform_0(%arg0: i32, %arg1: i32, %arg2: i32) -> (i32, i32) {
    %c0_i32 = arith.constant 0 : i32
    return %arg0, %arg2 : i32, i32
  }
  func.func @transform_1(%arg0: i32, %arg1: i32, %arg2: i32) -> (i32, i32) {
    %c0_i32 = arith.constant 0 : i32
    %c0_i32_0 = arith.constant 0 : i32
    return %c0_i32, %arg1 : i32, i32
  }
  func.func @transform_2(%arg0: i32, %arg1: i32, %arg2: i32) -> (i32, i32) {
    %c0_i32 = arith.constant 0 : i32
    return %arg0, %arg1 : i32, i32
  }
  func.func @transform_3(%arg0: i32, %arg1: i32, %arg2: i32) -> (i32, i32, i32) {
    %c0_i32 = arith.constant 0 : i32
    %c0_i32_0 = arith.constant 0 : i32
    return %arg0, %c0_i32, %arg1 : i32, i32, i32
  }
  func.func @transform_4(%arg0: i32, %arg1: i32, %arg2: i32) -> (i32, i32, i32) {
    %c0_i32 = arith.constant 0 : i32
    %c0_i32_0 = arith.constant 0 : i32
    return %arg0, %c0_i32, %arg1 : i32, i32, i32
  }
}

module attributes {stable_mosaic.version = 11 : i64} {
  func.func @_bn_act_kernel(%arg0: i32, %arg1: memref<1xf32, #tpu.memory_space<smem>>, %arg2: memref<1xf32, #tpu.memory_space<smem>>, %arg3: memref<48x128xbf16, #tpu.memory_space<vmem>>, %arg4: memref<1x128xf32, #tpu.memory_space<vmem>>, %arg5: memref<1x128xf32, #tpu.memory_space<vmem>>, %arg6: memref<48x2xf32, #tpu.memory_space<vmem>>, %arg7: memref<48x128xf32, #tpu.memory_space<vmem>>) attributes {dimension_semantics = [#tpu.dimension_semantics<parallel>], iteration_bounds = array<i64: 1>, scalar_prefetch = 0 : i64, scratch_operands = 0 : i64, tpu.core_type = #tpu.core_type<tc>, window_params = [{transform_indices = @transform_0, window_bounds = array<i64: 1>}, {transform_indices = @transform_1, window_bounds = array<i64: 1>}, {transform_indices = @transform_2, window_bounds = array<i64: 48, 128>}, {pipeline_mode = #tpu.pipeline_mode<synchronous>, transform_indices = @transform_3, window_bounds = array<i64: 1, 128>}, {pipeline_mode = #tpu.pipeline_mode<synchronous>, transform_indices = @transform_4, window_bounds = array<i64: 1, 128>}, {transform_indices = @transform_5, window_bounds = array<i64: 48, 2>}, {transform_indices = @transform_6, window_bounds = array<i64: 48, 128>}]} {
    %c0 = arith.constant 0 : index
    %0 = memref.load %arg1[%c0] : memref<1xf32, #tpu.memory_space<smem>>
    %c0_0 = arith.constant 0 : index
    %1 = memref.load %arg2[%c0_0] : memref<1xf32, #tpu.memory_space<smem>>
    %c0_1 = arith.constant 0 : index
    %c0_2 = arith.constant 0 : index
    %2 = vector.load %arg3[%c0_1, %c0_2] : memref<48x128xbf16, #tpu.memory_space<vmem>>, vector<48x128xbf16>
    %3 = arith.extf %2 : vector<48x128xbf16> to vector<48x128xf32>
    %c0_3 = arith.constant 0 : index
    %c0_4 = arith.constant 0 : index
    %4 = vector.load %arg4[%c0_3, %c0_4] : memref<1x128xf32, #tpu.memory_space<vmem>>, vector<1x128xf32>
    %5 = vector.broadcast %4 : vector<1x128xf32> to vector<48x128xf32>
    %6 = arith.mulf %3, %5 : vector<48x128xf32>
    %c0_5 = arith.constant 0 : index
    %c0_6 = arith.constant 0 : index
    %7 = vector.load %arg5[%c0_5, %c0_6] : memref<1x128xf32, #tpu.memory_space<vmem>>, vector<1x128xf32>
    %8 = vector.broadcast %7 : vector<1x128xf32> to vector<48x128xf32>
    %9 = arith.addf %6, %8 : vector<48x128xf32>
    %cst = arith.constant -1.000000e+00 : f32
    %10 = arith.divf %cst, %1 : f32
    %cst_7 = arith.constant 0.000000e+00 : f32
    %11 = arith.subf %cst_7, %0 : f32
    %12 = vector.broadcast %11 : f32 to vector<48x128xf32>
    %13 = arith.mulf %12, %9 : vector<48x128xf32>
    %14 = math.exp %13 : vector<48x128xf32>
    %15 = vector.broadcast %1 : f32 to vector<48x128xf32>
    %16 = arith.mulf %15, %14 : vector<48x128xf32>
    %cst_8 = arith.constant 1.000000e+00 : f32
    %17 = vector.broadcast %cst_8 : f32 to vector<48x128xf32>
    %18 = arith.addf %16, %17 : vector<48x128xf32>
    %19 = math.log %18 : vector<48x128xf32>
    %20 = vector.broadcast %10 : f32 to vector<48x128xf32>
    %21 = arith.mulf %20, %19 : vector<48x128xf32>
    %22 = math.exp %21 : vector<48x128xf32>
    %c0_9 = arith.constant 0 : index
    %c0_10 = arith.constant 0 : index
    %23 = vector.load %arg6[%c0_9, %c0_10] : memref<48x2xf32, #tpu.memory_space<vmem>>, vector<48x2xf32>
    %cst_11 = arith.constant 0.000000e+00 : f32
    %24 = vector.broadcast %cst_11 : f32 to vector<48x128xf32>
    %25 = vector.extract_strided_slice %23 {offsets = [0, 0], sizes = [48, 1], strides = [1, 1]} : vector<48x2xf32> to vector<48x1xf32>
    %26 = vector.broadcast %25 : vector<48x1xf32> to vector<48x128xf32>
    %27 = arith.subf %9, %26 : vector<48x128xf32>
    %cst_12 = arith.constant 0.000000e+00 : f32
    %28 = vector.broadcast %cst_12 : f32 to vector<48x128xf32>
    %29 = arith.maximumf %27, %28 : vector<48x128xf32>
    %30 = arith.addf %24, %29 : vector<48x128xf32>
    %31 = vector.extract_strided_slice %23 {offsets = [0, 1], sizes = [48, 1], strides = [1, 1]} : vector<48x2xf32> to vector<48x1xf32>
    %32 = vector.broadcast %31 : vector<48x1xf32> to vector<48x128xf32>
    %33 = arith.subf %9, %32 : vector<48x128xf32>
    %cst_13 = arith.constant 0.000000e+00 : f32
    %34 = vector.broadcast %cst_13 : f32 to vector<48x128xf32>
    %35 = arith.maximumf %33, %34 : vector<48x128xf32>
    %36 = arith.addf %30, %35 : vector<48x128xf32>
    %37 = arith.addf %22, %36 : vector<48x128xf32>
    %c0_14 = arith.constant 0 : index
    %c0_15 = arith.constant 0 : index
    %38 = vector.load %arg7[%c0_14, %c0_15] : memref<48x128xf32, #tpu.memory_space<vmem>>, vector<48x128xf32>
    tpu.vector_store %arg7[%c0_14, %c0_15], %37 {strides = array<i32>} : memref<48x128xf32, #tpu.memory_space<vmem>>, vector<48x128xf32>,
    return
  }
  func.func @transform_0(%arg0: i32) -> i32 {
    %c0_i32 = arith.constant 0 : i32
    %c0_i32_0 = arith.constant 0 : i32
    return %c0_i32 : i32
  }
  func.func @transform_1(%arg0: i32) -> i32 {
    %c0_i32 = arith.constant 0 : i32
    %c0_i32_0 = arith.constant 0 : i32
    return %c0_i32 : i32
  }
  func.func @transform_2(%arg0: i32) -> (i32, i32) {
    %c0_i32 = arith.constant 0 : i32
    %c0_i32_0 = arith.constant 0 : i32
    return %arg0, %c0_i32 : i32, i32
  }
  func.func @transform_3(%arg0: i32) -> (i32, i32) {
    %c0_i32 = arith.constant 0 : i32
    %c0_i32_0 = arith.constant 0 : i32
    %c0_i32_1 = arith.constant 0 : i32
    return %c0_i32, %c0_i32_0 : i32, i32
  }
  func.func @transform_4(%arg0: i32) -> (i32, i32) {
    %c0_i32 = arith.constant 0 : i32
    %c0_i32_0 = arith.constant 0 : i32
    %c0_i32_1 = arith.constant 0 : i32
    return %c0_i32, %c0_i32_0 : i32, i32
  }
  func.func @transform_5(%arg0: i32) -> (i32, i32) {
    %c0_i32 = arith.constant 0 : i32
    %c0_i32_0 = arith.constant 0 : i32
    return %arg0, %c0_i32 : i32, i32
  }
  func.func @transform_6(%arg0: i32) -> (i32, i32) {
    %c0_i32 = arith.constant 0 : i32
    %c0_i32_0 = arith.constant 0 : i32
    return %arg0, %c0_i32 : i32, i32
  }
}

module attributes {stable_mosaic.version = 11 : i64} {
  func.func @_bn_act_res_kernel(%arg0: i32, %arg1: memref<1xf32, #tpu.memory_space<smem>>, %arg2: memref<1xf32, #tpu.memory_space<smem>>, %arg3: memref<48x128xbf16, #tpu.memory_space<vmem>>, %arg4: memref<1x128xf32, #tpu.memory_space<vmem>>, %arg5: memref<1x128xf32, #tpu.memory_space<vmem>>, %arg6: memref<48x2xf32, #tpu.memory_space<vmem>>, %arg7: memref<48x128xf32, #tpu.memory_space<vmem>>, %arg8: memref<48x128xf32, #tpu.memory_space<vmem>>) attributes {dimension_semantics = [#tpu.dimension_semantics<parallel>], iteration_bounds = array<i64: 1>, scalar_prefetch = 0 : i64, scratch_operands = 0 : i64, tpu.core_type = #tpu.core_type<tc>, window_params = [{transform_indices = @transform_0, window_bounds = array<i64: 1>}, {transform_indices = @transform_1, window_bounds = array<i64: 1>}, {transform_indices = @transform_2, window_bounds = array<i64: 48, 128>}, {pipeline_mode = #tpu.pipeline_mode<synchronous>, transform_indices = @transform_3, window_bounds = array<i64: 1, 128>}, {pipeline_mode = #tpu.pipeline_mode<synchronous>, transform_indices = @transform_4, window_bounds = array<i64: 1, 128>}, {transform_indices = @transform_5, window_bounds = array<i64: 48, 2>}, {transform_indices = @transform_6, window_bounds = array<i64: 48, 128>}, {transform_indices = @transform_7, window_bounds = array<i64: 48, 128>}]} {
    %c0 = arith.constant 0 : index
    %c0_0 = arith.constant 0 : index
    %0 = vector.load %arg7[%c0, %c0_0] : memref<48x128xf32, #tpu.memory_space<vmem>>, vector<48x128xf32>
    %c0_1 = arith.constant 0 : index
    %1 = memref.load %arg1[%c0_1] : memref<1xf32, #tpu.memory_space<smem>>
    %c0_2 = arith.constant 0 : index
    %2 = memref.load %arg2[%c0_2] : memref<1xf32, #tpu.memory_space<smem>>
    %c0_3 = arith.constant 0 : index
    %c0_4 = arith.constant 0 : index
    %3 = vector.load %arg3[%c0_3, %c0_4] : memref<48x128xbf16, #tpu.memory_space<vmem>>, vector<48x128xbf16>
    %4 = arith.extf %3 : vector<48x128xbf16> to vector<48x128xf32>
    %c0_5 = arith.constant 0 : index
    %c0_6 = arith.constant 0 : index
    %5 = vector.load %arg4[%c0_5, %c0_6] : memref<1x128xf32, #tpu.memory_space<vmem>>, vector<1x128xf32>
    %6 = vector.broadcast %5 : vector<1x128xf32> to vector<48x128xf32>
    %7 = arith.mulf %4, %6 : vector<48x128xf32>
    %c0_7 = arith.constant 0 : index
    %c0_8 = arith.constant 0 : index
    %8 = vector.load %arg5[%c0_7, %c0_8] : memref<1x128xf32, #tpu.memory_space<vmem>>, vector<1x128xf32>
    %9 = vector.broadcast %8 : vector<1x128xf32> to vector<48x128xf32>
    %10 = arith.addf %7, %9 : vector<48x128xf32>
    %11 = arith.addf %10, %0 : vector<48x128xf32>
    %cst = arith.constant -1.000000e+00 : f32
    %12 = arith.divf %cst, %2 : f32
    %cst_9 = arith.constant 0.000000e+00 : f32
    %13 = arith.subf %cst_9, %1 : f32
    %14 = vector.broadcast %13 : f32 to vector<48x128xf32>
    %15 = arith.mulf %14, %11 : vector<48x128xf32>
    %16 = math.exp %15 : vector<48x128xf32>
    %17 = vector.broadcast %2 : f32 to vector<48x128xf32>
    %18 = arith.mulf %17, %16 : vector<48x128xf32>
    %cst_10 = arith.constant 1.000000e+00 : f32
    %19 = vector.broadcast %cst_10 : f32 to vector<48x128xf32>
    %20 = arith.addf %18, %19 : vector<48x128xf32>
    %21 = math.log %20 : vector<48x128xf32>
    %22 = vector.broadcast %12 : f32 to vector<48x128xf32>
    %23 = arith.mulf %22, %21 : vector<48x128xf32>
    %24 = math.exp %23 : vector<48x128xf32>
    %c0_11 = arith.constant 0 : index
    %c0_12 = arith.constant 0 : index
    %25 = vector.load %arg6[%c0_11, %c0_12] : memref<48x2xf32, #tpu.memory_space<vmem>>, vector<48x2xf32>
    %cst_13 = arith.constant 0.000000e+00 : f32
    %26 = vector.broadcast %cst_13 : f32 to vector<48x128xf32>
    %27 = vector.extract_strided_slice %25 {offsets = [0, 0], sizes = [48, 1], strides = [1, 1]} : vector<48x2xf32> to vector<48x1xf32>
    %28 = vector.broadcast %27 : vector<48x1xf32> to vector<48x128xf32>
    %29 = arith.subf %11, %28 : vector<48x128xf32>
    %cst_14 = arith.constant 0.000000e+00 : f32
    %30 = vector.broadcast %cst_14 : f32 to vector<48x128xf32>
    %31 = arith.maximumf %29, %30 : vector<48x128xf32>
    %32 = arith.addf %26, %31 : vector<48x128xf32>
    %33 = vector.extract_strided_slice %25 {offsets = [0, 1], sizes = [48, 1], strides = [1, 1]} : vector<48x2xf32> to vector<48x1xf32>
    %34 = vector.broadcast %33 : vector<48x1xf32> to vector<48x128xf32>
    %35 = arith.subf %11, %34 : vector<48x128xf32>
    %cst_15 = arith.constant 0.000000e+00 : f32
    %36 = vector.broadcast %cst_15 : f32 to vector<48x128xf32>
    %37 = arith.maximumf %35, %36 : vector<48x128xf32>
    %38 = arith.addf %32, %37 : vector<48x128xf32>
    %39 = arith.addf %24, %38 : vector<48x128xf32>
    %c0_16 = arith.constant 0 : index
    %c0_17 = arith.constant 0 : index
    %40 = vector.load %arg8[%c0_16, %c0_17] : memref<48x128xf32, #tpu.memory_space<vmem>>, vector<48x128xf32>
    tpu.vector_store %arg8[%c0_16, %c0_17], %39 {strides = array<i32>} : memref<48x128xf32, #tpu.memory_space<vmem>>, vector<48x128xf32>,
    return
  }
  func.func @transform_0(%arg0: i32) -> i32 {
    %c0_i32 = arith.constant 0 : i32
    %c0_i32_0 = arith.constant 0 : i32
    return %c0_i32 : i32
  }
  func.func @transform_1(%arg0: i32) -> i32 {
    %c0_i32 = arith.constant 0 : i32
    %c0_i32_0 = arith.constant 0 : i32
    return %c0_i32 : i32
  }
  func.func @transform_2(%arg0: i32) -> (i32, i32) {
    %c0_i32 = arith.constant 0 : i32
    %c0_i32_0 = arith.constant 0 : i32
    return %arg0, %c0_i32 : i32, i32
  }
  func.func @transform_3(%arg0: i32) -> (i32, i32) {
    %c0_i32 = arith.constant 0 : i32
    %c0_i32_0 = arith.constant 0 : i32
    %c0_i32_1 = arith.constant 0 : i32
    return %c0_i32, %c0_i32_0 : i32, i32
  }
  func.func @transform_4(%arg0: i32) -> (i32, i32) {
    %c0_i32 = arith.constant 0 : i32
    %c0_i32_0 = arith.constant 0 : i32
    %c0_i32_1 = arith.constant 0 : i32
    return %c0_i32, %c0_i32_0 : i32, i32
  }
  func.func @transform_5(%arg0: i32) -> (i32, i32) {
    %c0_i32 = arith.constant 0 : i32
    %c0_i32_0 = arith.constant 0 : i32
    return %arg0, %c0_i32 : i32, i32
  }
  func.func @transform_6(%arg0: i32) -> (i32, i32) {
    %c0_i32 = arith.constant 0 : i32
    %c0_i32_0 = arith.constant 0 : i32
    return %arg0, %c0_i32 : i32, i32
  }
  func.func @transform_7(%arg0: i32) -> (i32, i32) {
    %c0_i32 = arith.constant 0 : i32
    %c0_i32_0 = arith.constant 0 : i32
    return %arg0, %c0_i32 : i32, i32
  }
}

</mosaic_0001>

<bundles_post_ra>
// kernel: squeeze.4
= control target key start
LH: loop header
LB: loop body
LE: loop exit
PB: predicated region body
PF: predicated region fallthrough
CT: control target
= control target key end

     0   :  { %s46_s0 = inlined_call_operand.vmem [shape: f32[1,8,3], index: 0, kind: input, shape index: {}]   ;;  %s47_s1 = inlined_call_operand.vmem [shape: f32[8,3,1], index: 1, kind: output, shape index: {}]  }
   0x1   :  { %v4_v0 = vld [vmem:[%s46_s0] ss:$0 sm:$0xff]  ;;  %v14_v1 = vld [vmem:[%s46_s0 + $0x1] ss:$0 sm:$0xff]  ;;  %v16_v2 = vld [vmem:[%s46_s0 + $0x2] ss:$0 sm:$0xff] }
   0x2   :  { %5 = vst [vmem:[%s47_s1] sm:$0x1] %v4_v0  ;;  %15 = vst [vmem:[%s47_s1 + $0x1] sm:$0x1] %v14_v1 }
   0x3   :  { %17 = vst [vmem:[%s47_s1 + $0x2] sm:$0x1] %v16_v2 }

// kernel: basic_block_forward.4
= control target key start
LH: loop header
LB: loop body
LE: loop exit
PB: predicated region body
PF: predicated region fallthrough
CT: control target
= control target key end

     0   :  { %v377_v0 = vmov 0.0   ;;  %vm378_vm0 = vmmov 0   ;;  %s455_s1 = inlined_call_operand.vmem [shape: bf16[128,128], index: 1, kind: input, shape index: {}]   ;;  %s456_s0 = inlined_call_operand.vmem [shape: bf16[48,128], index: 0, kind: input, shape index: {}]   ;;  %s457_s2 = inlined_call_operand.vmem [shape: bf16[48,128], index: 2, kind: output, shape index: {0}]   ;;  %s458_s3 = inlined_call_operand.vmem [shape: f32[1,1,128], index: 3, kind: output, shape index: {1}]   ;;  %s459_s4 = inlined_call_operand.vmem [shape: f32[1,1,128], index: 4, kind: output, shape index: {2}]  }
   0x1   :  { %320 = vmatprep.subr.bf16.mxu0 %v377_v0  ;;  %348 = vmatprep.subr.bf16.mxu1 %v377_v0  ;;  %v366_v1 = vld [vmem:[%s455_s1] sm:$0xff]   ;;  %v367_v2 = vld [vmem:[%s455_s1 + $0x8] sm:$0xff]   ;;  %v368_v3 = vld [vmem:[%s455_s1 + $0x10] sm:$0xff]  }
   0x2   :  { %336 = vmatprep.mubr.msk.bf16.mxu0 %vm378_vm0, %v377_v0  ;;  %340 = vmatprep.mubr.msk.bf16.mxu1 %vm378_vm0, %v377_v0  ;;  %v369_v4 = vld [vmem:[%s455_s1 + $0x18] sm:$0xff]   ;;  %v370_v5 = vld [vmem:[%s455_s1 + $0x20] sm:$0xff]   ;;  %v371_v6 = vld [vmem:[%s455_s1 + $0x28] sm:$0xff]  }
   0x3   :  { %321 = vmatpush3.bf16.msra.mxu0 %v366_v1  ;;  %356 = vmatpush3.bf16.msra.mxu1 %v366_v1  ;;  %v372_v7 = vld [vmem:[%s455_s1 + $0x30] sm:$0xff]   ;;  %v373_v8 = vld [vmem:[%s455_s1 + $0x38] sm:$0xff]   ;;  %v374_v9 = vld [vmem:[%s456_s0] sm:$0xff]  }
   0x4   :  { %322 = vmatprep.subr.bf16.mxu0 %v377_v0  ;;  %349 = vmatprep.subr.bf16.mxu1 %v377_v0  ;;  %v375_v10 = vld [vmem:[%s456_s0 + $0x8] sm:$0xff]   ;;  %v376_v11 = vld [vmem:[%s456_s0 + $0x10] sm:$0xff]  }
   0x7   :  { %323 = vmatpush3.bf16.msra.mxu0 %v367_v2  ;;  %357 = vmatpush3.bf16.msra.mxu1 %v367_v2 }
   0x8   :  { %324 = vmatprep.subr.bf16.mxu0 %v377_v0  ;;  %350 = vmatprep.subr.bf16.mxu1 %v377_v0 }
   0xb   :  { %325 = vmatpush3.bf16.msra.mxu0 %v368_v3  ;;  %358 = vmatpush3.bf16.msra.mxu1 %v368_v3 }
   0xc   :  { %326 = vmatprep.subr.bf16.mxu0 %v377_v0  ;;  %351 = vmatprep.subr.bf16.mxu1 %v377_v0 }
   0xf   :  { %327 = vmatpush3.bf16.msra.mxu0 %v369_v4  ;;  %359 = vmatpush3.bf16.msra.mxu1 %v369_v4 }
  0x10   :  { %328 = vmatprep.subr.bf16.mxu0 %v377_v0  ;;  %352 = vmatprep.subr.bf16.mxu1 %v377_v0 }
  0x13   :  { %329 = vmatpush3.bf16.msra.mxu0 %v370_v5  ;;  %360 = vmatpush3.bf16.msra.mxu1 %v370_v5 }
  0x14   :  { %330 = vmatprep.subr.bf16.mxu0 %v377_v0  ;;  %353 = vmatprep.subr.bf16.mxu1 %v377_v0 }
  0x17   :  { %331 = vmatpush3.bf16.msra.mxu0 %v371_v6  ;;  %361 = vmatpush3.bf16.msra.mxu1 %v371_v6 }
  0x18   :  { %332 = vmatprep.subr.bf16.mxu0 %v377_v0  ;;  %354 = vmatprep.subr.bf16.mxu1 %v377_v0 }
  0x1b   :  { %333 = vmatpush3.bf16.msra.mxu0 %v372_v7  ;;  %362 = vmatpush3.bf16.msra.mxu1 %v372_v7 }
  0x1c   :  { %334 = vmatprep.subr.bf16.mxu0 %v377_v0  ;;  %355 = vmatprep.subr.bf16.mxu1 %v377_v0 }
  0x1f   :  { %335 = vmatpush3.bf16.msra.mxu0 %v373_v8  ;;  %363 = vmatpush3.bf16.msra.mxu1 %v373_v8 }
  0x22   :  { %337 = vmatmul.mubr.bf16.vlgmr.msra.gmra.mrb[0].mxu0 %v374_v9  ;;  %341 = vmatmul.mubr.bf16.vlgmr.msra.gmra.mrb[0].mxu1 %v375_v10 }
  0x23   :  { %344 = vmatprep.mubr.msk.bf16.mxu1 %vm378_vm0, %v377_v0 }
  0x2a   :  { %345 = vmatmul.mubr.bf16.gmra.mrb[4].mxu1 %v376_v11 }
  0xf5   :  { %v153_v12 = vpop.f32.mrb[0].mxu0  ;;  %v161_v13 = vpop.f32.mrb[0].mxu1 }
  0xf6   :  { %v338_v14 = vpop.f32.mrb[1].mxu0  ;;  %v342_v15 = vpop.f32.mrb[1].mxu1  ;;  %v239_v16 = vmul.f32 %v153_v12, %v153_v12  ;;  %v241_v25 = vmul.f32 %v161_v13, %v161_v13 }
  0xf7   :  { %v156_v17 = vpop.f32.mrb[2].mxu0  ;;  %v164_v18 = vpop.f32.mrb[2].mxu1 }
  0xf8   :  { %v295_v19 = vpack.c.bf16 %v156_v17, %v153_v12  ;;  %v227_v20 = vadd.f32 %v156_v17, %v153_v12  ;;  %v240_v21 = vmul.f32 %v156_v17, %v156_v17  ;;  %v300_v22 = vpack.c.bf16 %v164_v18, %v161_v13  ;;  %v339_v23 = vpop.f32.mrb[3].mxu0  ;;  %v343_v24 = vpop.f32.mrb[3].mxu1 }
  0xf9   :  { %v242_v29 = vmul.f32 %v164_v18, %v164_v18 }
  0xfa   :  { %296 = vst [vmem:[%s457_s2] sm:$0xff] %v295_v19   ;;  %v245_v26 = vadd.f32 %v240_v21, %v239_v16  ;;  %307 = vst [vmem:[%s457_s2 + $0x8] sm:$0xff] %v300_v22   ;;  %v228_v27 = vadd.f32 %v227_v20, %v161_v13 }
  0xfc   :  { %v229_v28 = vadd.f32 %v228_v27, %v164_v18  ;;  %v246_v30 = vadd.f32 %v245_v26, %v241_v25 }
  0xfd   :  { %v169_v31 = vpop.f32.mrb[4].mxu1 }
  0xfe   :  { %v247_v32 = vadd.f32 %v246_v30, %v242_v29  ;;  %v230_v33 = vadd.f32 %v229_v28, %v169_v31  ;;  %v243_v34 = vmul.f32 %v169_v31, %v169_v31  ;;  %v346_v35 = vpop.f32.mrb[5].mxu1 }
  0xff   :  { %v172_v36 = vpop.f32.mrb[6].mxu1 }
 0x100   :  { %v248_v37 = vadd.f32 %v247_v32, %v243_v34  ;;  %v305_v38 = vpack.c.bf16 %v172_v36, %v169_v31  ;;  %v231_v39 = vadd.f32 %v230_v33, %v172_v36  ;;  %v244_v40 = vmul.f32 %v172_v36, %v172_v36  ;;  %v347_v41 = vpop.f32.mrb[7].mxu1 }
 0x102   :  { %308 = vst [vmem:[%s457_s2 + $0x10] sm:$0xff] %v305_v38   ;;  %v232_v42 = vrot.slane %v231_v39, 4  ;;  %v249_v43 = vadd.f32 %v248_v37, %v244_v40 }
 0x104   :  { %v233_v44 = vadd.f32 %v232_v42, %v231_v39  ;;  %v250_v45 = vrot.slane %v249_v43, 4 }
 0x106   :  { %v234_v46 = vrot.slane %v233_v44, 2  ;;  %v251_v47 = vadd.f32 %v250_v45, %v249_v43 }
 0x108   :  { %v235_v48 = vadd.f32 %v234_v46, %v233_v44  ;;  %v252_v49 = vrot.slane %v251_v47, 2 }
 0x10a   :  { %v236_v50 = vrot.slane %v235_v48, 1  ;;  %v253_v51 = vadd.f32 %v252_v49, %v251_v47 }
 0x10c   :  { %v237_v52 = vadd.f32 %v236_v50, %v235_v48  ;;  %v254_v53 = vrot.slane %v253_v51, 1 }
 0x10e   :  { %238 = vst [vmem:[%s458_s3] sm:$0x1] %v237_v52  ;;  %v255_v54 = vadd.f32 %v254_v53, %v253_v51 }
 0x110   :  { %256 = vst [vmem:[%s459_s4] sm:$0x1] %v255_v54 }

// kernel: basic_block_forward.5
= control target key start
LH: loop header
LB: loop body
LE: loop exit
PB: predicated region body
PF: predicated region fallthrough
CT: control target
= control target key end

     0   :  { %v307_v0 = vmov 0   ;;  %v308_v9 = vmov 1   ;;  %s440_s5 = inlined_call_operand.vmem [shape: f32[48,2], index: 5, kind: input, shape index: {}]   ;;  %s441_s1 = inlined_call_operand.<no memory space> [shape: f32[1], index: 1, kind: input, shape index: {}]   ;;  %s442_s2 = inlined_call_operand.vmem [shape: bf16[48,128], index: 2, kind: input, shape index: {}]   ;;  %s443_s3 = inlined_call_operand.vmem [shape: f32[1,128], index: 3, kind: input, shape index: {}]   ;;  %s444_s0 = inlined_call_operand.<no memory space> [shape: f32[1], index: 0, kind: input, shape index: {}]   ;;  %s445_s4 = inlined_call_operand.vmem [shape: f32[1,128], index: 4, kind: input, shape index: {}]   ;;  %s446_s6 = inlined_call_operand.vmem [shape: f32[48,128], index: 6, kind: output, shape index: {}]  }
   0x1   :  { %266 = vset.pattern.permute.xlu1 %v307_v0  ;;  %265 = vset.pattern.permute.xlu0 %v307_v0  ;;  %v135_v1 = vld [vmem:[%s440_s5 + $0x10] sm:$0xff]  ;;  %v133_v2 = vld [vmem:[%s440_s5] sm:$0xff]  ;;  %v353_v3 = vstv %s441_s1  ;;  %v136_v4 = vld [vmem:[%s440_s5 + $0x18] sm:$0xff]  ;;  %s69_s19 = ssub.f32 0.0, %s444_s0 }
   0x2   :  { %151 = vperm.xlu1 %266, %v135_v1   ;;  %141 = vperm.xlu0 %265, %v133_v2   ;;  %269 = vrcp.f32 %v353_v3  ;;  %v134_v5 = vld [vmem:[%s440_s5 + $0x8] sm:$0xff]  ;;  %v137_v7 = vld [vmem:[%s440_s5 + $0x20] sm:$0xff]  ;;  %v260_v20 = vld [vmem:[%s442_s2 + $0x10] sm:$0xff]  }
   0x3   :  { %v138_v6 = vld [vmem:[%s440_s5 + $0x28] sm:$0xff]  ;;  %v248_v10 = vld [vmem:[%s442_s2] sm:$0xff]   ;;  %v257_v23 = vunpack.c.l.bf16 %v260_v20  ;;  %v70_v24 = vstv %s69_s19  ;;  %v258_v27 = vunpack.c.h.bf16 %v260_v20 }
   0x4   :  { %v249_v11 = vunpack.c.l.bf16 %v248_v10  ;;  %v259_v12 = vld [vmem:[%s442_s2 + $0x8] sm:$0xff]   ;;  %v245_v13 = vld [vmem:[%s443_s3] ss:$0 sm:$0xff]  ;;  %v250_v14 = vunpack.c.h.bf16 %v248_v10 }
   0x5   :  { %v253_v15 = vunpack.c.l.bf16 %v259_v12  ;;  %v246_v17 = vld [vmem:[%s445_s4] ss:$0 sm:$0xff]  ;;  %v254_v18 = vunpack.c.h.bf16 %v259_v12  ;;  %v50_v30 = vmul.f32 %v257_v23, %v245_v13  ;;  %v51_v33 = vmul.f32 %v258_v27, %v245_v13 }
   0x6   :  { %156 = vperm.xlu1 %266, %v136_v4   ;;  %146 = vperm.xlu0 %265, %v134_v5   ;;  %v46_v16 = vmul.f32 %v249_v11, %v245_v13  ;;  %v47_v19 = vmul.f32 %v250_v14, %v245_v13 }
   0x7   :  { %v48_v21 = vmul.f32 %v253_v15, %v245_v13  ;;  %v49_v25 = vmul.f32 %v254_v18, %v245_v13  ;;  %v397_v36 = vadd.f32 %v246_v17, %v50_v30  ;;  %v400_v39 = vadd.f32 %v246_v17, %v51_v33 }
   0x8   :  { %v386_v22 = vadd.f32 %v246_v17, %v46_v16  ;;  %v388_v26 = vadd.f32 %v246_v17, %v47_v19 }
   0x9   :  { %v390_v28 = vadd.f32 %v246_v17, %v48_v21  ;;  %v393_v31 = vadd.f32 %v246_v17, %v49_v25  ;;  %v75_v41 = vmul.f32 %v70_v24, %v397_v36  ;;  %v76_v43 = vmul.f32 %v70_v24, %v400_v39 }
   0xa   :  { %166 = vperm.xlu1 %266, %v138_v6   ;;  %161 = vperm.xlu0 %265, %v137_v7   ;;  %v71_v29 = vmul.f32 %v70_v24, %v386_v22  ;;  %v72_v32 = vmul.f32 %v70_v24, %v388_v26 }
   0xb   :  { %v73_v34 = vmul.f32 %v70_v24, %v390_v28  ;;  %v74_v37 = vmul.f32 %v70_v24, %v393_v31  ;;  %v85_v44 = vmul.f32 1.442695, %v75_v41  ;;  %v87_v45 = vmul.f32 1.442695, %v76_v43 }
   0xc   :  { %v270_v8 = vpop.eup %269  ;;  %v77_v35 = vmul.f32 1.442695, %v71_v29  ;;  %v79_v38 = vmul.f32 1.442695, %v72_v32 }
   0xd   :  { %261 = vpush %v270_v8  ;;  %v81_v40 = vmul.f32 1.442695, %v73_v34  ;;  %v83_v42 = vmul.f32 1.442695, %v74_v37 }
   0xe   :  { %268 = vset.pattern.permute.xlu1 %v308_v9  ;;  %267 = vset.pattern.permute.xlu0 %v308_v9  ;;  %271 = vpow2.f32 %v77_v35 }
   0xf   :  { %192 = vperm.xlu1 %268, %v134_v5   ;;  %188 = vperm.xlu0 %267, %v133_v2   ;;  %273 = vpow2.f32 %v79_v38 }
  0x10   :  { %275 = vpow2.f32 %v81_v40 }
  0x11   :  { %277 = vpow2.f32 %v83_v42 }
  0x12   :  { %279 = vpow2.f32 %v85_v44 }
  0x13   :  { %196 = vperm.xlu1 %268, %v135_v1   ;;  %200 = vperm.xlu0 %267, %v136_v4   ;;  %281 = vpow2.f32 %v87_v45 }
  0x17   :  { %204 = vperm.xlu1 %268, %v137_v7   ;;  %208 = vperm.xlu0 %267, %v138_v6  }
  0x18   :  { %v272_v46 = vpop.eup %271 }
  0x19   :  { %v274_v47 = vpop.eup %273  ;;  %v90_v48 = vmul.f32 %v272_v46, %v353_v3 }
  0x1a   :  { %v276_v49 = vpop.eup %275  ;;  %v91_v50 = vmul.f32 %v274_v47, %v353_v3 }
  0x1b   :  { %v278_v51 = vpop.eup %277  ;;  %v92_v52 = vmul.f32 %v276_v49, %v353_v3  ;;  %v96_v53 = vadd.f32 1.0, %v90_v48 }
  0x1c   :  { %v280_v54 = vpop.eup %279  ;;  %v93_v55 = vmul.f32 %v278_v51, %v353_v3  ;;  %v97_v56 = vadd.f32 1.0, %v91_v50 }
  0x1d   :  { %v282_v57 = vpop.eup %281  ;;  %v98_v58 = vadd.f32 1.0, %v92_v52  ;;  %283 = vlog2.f32 %v96_v53  ;;  %v94_v59 = vmul.f32 %v280_v54, %v353_v3 }
  0x1e   :  { %v99_v60 = vadd.f32 1.0, %v93_v55  ;;  %v95_v61 = vmul.f32 %v282_v57, %v353_v3  ;;  %285 = vlog2.f32 %v97_v56 }
  0x1f   :  { %287 = vlog2.f32 %v98_v58  ;;  %v100_v62 = vadd.f32 1.0, %v94_v59 }
  0x20   :  { %v101_v63 = vadd.f32 1.0, %v95_v61  ;;  %289 = vlog2.f32 %v99_v60 }
  0x21   :  { %291 = vlog2.f32 %v100_v62 }
  0x22   :  { %293 = vlog2.f32 %v101_v63 }
  0x27   :  { %v284_v0 = vpop.eup %283 }
  0x28   :  { %v286_v1 = vpop.eup %285  ;;  %v103_v2 = vmul.f32 0.6931472, %v284_v0 }
  0x29   :  { %v288_v4 = vpop.eup %287  ;;  %v105_v6 = vmul.f32 0.6931472, %v286_v1 }
  0x2a   :  { %v290_v7 = vpop.eup %289  ;;  %v107_v8 = vmul.f32 0.6931472, %v288_v4 }
  0x2b   :  { %v292_v10 = vpop.eup %291  ;;  %v109_v11 = vmul.f32 0.6931472, %v290_v7 }
  0x2c   :  { %v294_v12 = vpop.eup %293  ;;  %v111_v17 = vmul.f32 0.6931472, %v292_v10 }
  0x2d   :  { %v113_v20 = vmul.f32 0.6931472, %v294_v12 }
  0x3e   :  { %s262_s0 = spop %261 }
  0x3f   :  { %s68_s2 = smul.f32 -1.0, %s262_s0 }
  0x41   :  { %v114_v5 = vstv %s68_s2 }
  0x42   :  { %v115_v9 = vmul.f32 %v114_v5, %v103_v2  ;;  %v116_v3 = vmul.f32 %v114_v5, %v105_v6  ;;  %v117_v15 = vmul.f32 %v114_v5, %v107_v8  ;;  %v118_v19 = vmul.f32 %v114_v5, %v109_v11 }
  0x43   :  { %v119_v25 = vmul.f32 %v114_v5, %v111_v17  ;;  %v120_v29 = vmul.f32 %v114_v5, %v113_v20 }
  0x44   :  { %v121_v16 = vmul.f32 1.442695, %v115_v9  ;;  %v123_v18 = vmul.f32 1.442695, %v116_v3  ;;  %v125_v24 = vmul.f32 1.442695, %v117_v15 }
  0x45   :  { %v127_v27 = vmul.f32 1.442695, %v118_v19  ;;  %v129_v33 = vmul.f32 1.442695, %v119_v25  ;;  %v131_v34 = vmul.f32 1.442695, %v120_v29 }
  0x46   :  { %295 = vpow2.f32 %v121_v16 }
  0x47   :  { %297 = vpow2.f32 %v123_v18 }
  0x48   :  { %299 = vpow2.f32 %v125_v24 }
  0x49   :  { %301 = vpow2.f32 %v127_v27 }
  0x4a   :  { %303 = vpow2.f32 %v129_v33 }
  0x4b   :  { %305 = vpow2.f32 %v131_v34 }
  0x50   :  { %v296_v45 = vpop.eup %295 }
  0x51   :  { %v298_v50 = vpop.eup %297 }
  0x52   :  { %v300_v59 = vpop.eup %299 }
  0x53   :  { %v302_v0 = vpop.eup %301 }
  0x54   :  { %v304_v8 = vpop.eup %303 }
  0x55   :  { %v306_v12 = vpop.eup %305 }
  0x81   :  { %v152_v13 = vpop.permute.xlu1 %151  ;;  %v142_v14 = vpop.permute.xlu0 %141 }
  0x82   :  { %v169_v35 = vsub.f32 %v386_v22, %v142_v14  ;;  %v171_v43 = vsub.f32 %v390_v28, %v152_v13 }
  0x84   :  { %v175_v46 = vmax.f32 %v169_v35, 0.0  ;;  %v177_v55 = vmax.f32 %v171_v43, 0.0 }
  0x85   :  { %v157_v21 = vpop.permute.xlu1 %156  ;;  %v147_v23 = vpop.permute.xlu0 %146 }
  0x86   :  { %v170_v37 = vsub.f32 %v388_v26, %v147_v23  ;;  %v172_v44 = vsub.f32 %v393_v31, %v157_v21 }
  0x88   :  { %v176_v47 = vmax.f32 %v170_v37, 0.0  ;;  %v178_v56 = vmax.f32 %v172_v44, 0.0 }
  0x89   :  { %v167_v30 = vpop.permute.xlu1 %166  ;;  %v162_v32 = vpop.permute.xlu0 %161 }
  0x8a   :  { %v174_v57 = vsub.f32 %v400_v39, %v167_v30  ;;  %v173_v58 = vsub.f32 %v397_v36, %v162_v32 }
  0x8c   :  { %v180_v6 = vmax.f32 %v174_v57, 0.0  ;;  %v179_v7 = vmax.f32 %v173_v58, 0.0 }
  0x8e   :  { %v193_v38 = vpop.permute.xlu1 %192  ;;  %v189_v40 = vpop.permute.xlu0 %188 }
  0x8f   :  { %v212_v41 = vsub.f32 %v388_v26, %v193_v38  ;;  %v211_v42 = vsub.f32 %v386_v22, %v189_v40 }
  0x91   :  { %v218_v48 = vmax.f32 %v212_v41, 0.0  ;;  %v217_v49 = vmax.f32 %v211_v42, 0.0 }
  0x92   :  { %v197_v51 = vpop.permute.xlu1 %196  ;;  %v201_v52 = vpop.permute.xlu0 %200 }
  0x93   :  { %v224_v53 = vadd.f32 %v218_v48, %v176_v47  ;;  %v223_v54 = vadd.f32 %v217_v49, %v175_v46  ;;  %v213_v26 = vsub.f32 %v390_v28, %v197_v51  ;;  %v214_v22 = vsub.f32 %v393_v31, %v201_v52 }
  0x95   :  { %v230_v60 = vadd.f32 %v298_v50, %v224_v53  ;;  %v229_v61 = vadd.f32 %v296_v45, %v223_v54  ;;  %v219_v62 = vmax.f32 %v213_v26, 0.0  ;;  %v220_v63 = vmax.f32 %v214_v22, 0.0 }
  0x96   :  { %v205_v1 = vpop.permute.xlu1 %204  ;;  %v209_v2 = vpop.permute.xlu0 %208 }
  0x97   :  { %236 = vst [vmem:[%s446_s6 + $0x8] sm:$0xff] %v230_v60  ;;  %235 = vst [vmem:[%s446_s6] sm:$0xff] %v229_v61  ;;  %v225_v28 = vadd.f32 %v219_v62, %v177_v55  ;;  %v226_v31 = vadd.f32 %v220_v63, %v178_v56  ;;  %v215_v4 = vsub.f32 %v397_v36, %v205_v1 }
  0x98   :  { %v216_v5 = vsub.f32 %v400_v39, %v209_v2 }
  0x99   :  { %v231_v9 = vadd.f32 %v300_v59, %v225_v28  ;;  %v232_v10 = vadd.f32 %v302_v0, %v226_v31  ;;  %v221_v3 = vmax.f32 %v215_v4, 0.0 }
  0x9a   :  { %v222_v11 = vmax.f32 %v216_v5, 0.0 }
  0x9b   :  { %237 = vst [vmem:[%s446_s6 + $0x10] sm:$0xff] %v231_v9  ;;  %238 = vst [vmem:[%s446_s6 + $0x18] sm:$0xff] %v232_v10  ;;  %v227_v13 = vadd.f32 %v221_v3, %v179_v7 }
  0x9c   :  { %v228_v36 = vadd.f32 %v222_v11, %v180_v6 }
  0x9d   :  { %v233_v14 = vadd.f32 %v304_v8, %v227_v13 }
  0x9e   :  { %v234_v39 = vadd.f32 %v306_v12, %v228_v36 }
  0x9f   :  { %239 = vst [vmem:[%s446_s6 + $0x20] sm:$0xff] %v233_v14 }
  0xa0   :  { %240 = vst [vmem:[%s446_s6 + $0x28] sm:$0xff] %v234_v39 }

// kernel: basic_block_forward.7
= control target key start
LH: loop header
LB: loop body
LE: loop exit
PB: predicated region body
PF: predicated region fallthrough
CT: control target
= control target key end

     0   :  { %v322_v0 = vmov 0   ;;  %v323_v9 = vmov 1   ;;  %s478_s5 = inlined_call_operand.vmem [shape: f32[48,2], index: 5, kind: input, shape index: {}]   ;;  %s479_s1 = inlined_call_operand.<no memory space> [shape: f32[1], index: 1, kind: input, shape index: {}]   ;;  %s480_s2 = inlined_call_operand.vmem [shape: bf16[48,128], index: 2, kind: input, shape index: {}]   ;;  %s481_s3 = inlined_call_operand.vmem [shape: f32[1,128], index: 3, kind: input, shape index: {}]   ;;  %s482_s4 = inlined_call_operand.vmem [shape: f32[1,128], index: 4, kind: input, shape index: {}]   ;;  %s483_s6 = inlined_call_operand.vmem [shape: f32[48,128], index: 6, kind: input, shape index: {}]   ;;  %s484_s0 = inlined_call_operand.<no memory space> [shape: f32[1], index: 0, kind: input, shape index: {}]   ;;  %s485_s7 = inlined_call_operand.vmem [shape: f32[48,128], index: 7, kind: output, shape index: {}]  }
   0x1   :  { %281 = vset.pattern.permute.xlu1 %v322_v0  ;;  %280 = vset.pattern.permute.xlu0 %v322_v0  ;;  %v150_v1 = vld [vmem:[%s478_s5 + $0x10] sm:$0xff]  ;;  %v148_v2 = vld [vmem:[%s478_s5] sm:$0xff]  ;;  %v373_v3 = vstv %s479_s1  ;;  %v151_v4 = vld [vmem:[%s478_s5 + $0x18] sm:$0xff] }
   0x2   :  { %166 = vperm.xlu1 %281, %v150_v1   ;;  %156 = vperm.xlu0 %280, %v148_v2   ;;  %284 = vrcp.f32 %v373_v3  ;;  %v149_v5 = vld [vmem:[%s478_s5 + $0x8] sm:$0xff]  ;;  %v152_v7 = vld [vmem:[%s478_s5 + $0x20] sm:$0xff]  ;;  %v275_v20 = vld [vmem:[%s480_s2 + $0x10] sm:$0xff]  }
   0x3   :  { %v153_v6 = vld [vmem:[%s478_s5 + $0x28] sm:$0xff]  ;;  %v263_v10 = vld [vmem:[%s480_s2] sm:$0xff]   ;;  %v272_v23 = vunpack.c.l.bf16 %v275_v20  ;;  %v273_v27 = vunpack.c.h.bf16 %v275_v20  ;;  %v30_v32 = vld [vmem:[%s483_s6 + $0x10] sm:$0xff] }
   0x4   :  { %v264_v11 = vunpack.c.l.bf16 %v263_v10  ;;  %v274_v12 = vld [vmem:[%s480_s2 + $0x8] sm:$0xff]   ;;  %v260_v13 = vld [vmem:[%s481_s3] ss:$0 sm:$0xff]  ;;  %v265_v14 = vunpack.c.h.bf16 %v263_v10  ;;  %s84_s3 = ssub.f32 0.0, %s484_s0  ;;  %v31_v37 = vld [vmem:[%s483_s6 + $0x18] sm:$0xff] }
   0x5   :  { %v268_v15 = vunpack.c.l.bf16 %v274_v12  ;;  %v261_v17 = vld [vmem:[%s482_s4] ss:$0 sm:$0xff]  ;;  %v269_v18 = vunpack.c.h.bf16 %v274_v12  ;;  %v29_v28 = vld [vmem:[%s483_s6 + $0x8] sm:$0xff]  ;;  %v59_v31 = vmul.f32 %v272_v23, %v260_v13  ;;  %v60_v36 = vmul.f32 %v273_v27, %v260_v13 }
   0x6   :  { %171 = vperm.xlu1 %281, %v151_v4   ;;  %161 = vperm.xlu0 %280, %v149_v5   ;;  %v55_v16 = vmul.f32 %v264_v11, %v260_v13  ;;  %v56_v19 = vmul.f32 %v265_v14, %v260_v13  ;;  %v28_v24 = vld [vmem:[%s483_s6] sm:$0xff]  ;;  %v85_v33 = vstv %s84_s3  ;;  %v33_v45 = vld [vmem:[%s483_s6 + $0x28] sm:$0xff] }
   0x7   :  { %v57_v21 = vmul.f32 %v268_v15, %v260_v13  ;;  %v58_v25 = vmul.f32 %v269_v18, %v260_v13  ;;  %v72_v40 = vadd.f32 %v261_v17, %v59_v31  ;;  %v73_v43 = vadd.f32 %v261_v17, %v60_v36  ;;  %v32_v44 = vld [vmem:[%s483_s6 + $0x20] sm:$0xff] }
   0x8   :  { %v68_v22 = vadd.f32 %v261_v17, %v55_v16  ;;  %v69_v26 = vadd.f32 %v261_v17, %v56_v19 }
   0x9   :  { %v70_v29 = vadd.f32 %v261_v17, %v57_v21  ;;  %v71_v34 = vadd.f32 %v261_v17, %v58_v25  ;;  %v435_v48 = vadd.f32 %v72_v40, %v32_v44  ;;  %v438_v51 = vadd.f32 %v73_v43, %v33_v45 }
   0xa   :  { %181 = vperm.xlu1 %281, %v153_v6   ;;  %176 = vperm.xlu0 %280, %v152_v7   ;;  %v412_v30 = vadd.f32 %v68_v22, %v28_v24  ;;  %v417_v35 = vadd.f32 %v69_v26, %v29_v28 }
   0xb   :  { %v422_v38 = vadd.f32 %v70_v29, %v30_v32  ;;  %v425_v41 = vadd.f32 %v71_v34, %v31_v37  ;;  %v90_v53 = vmul.f32 %v85_v33, %v435_v48  ;;  %v91_v55 = vmul.f32 %v85_v33, %v438_v51 }
   0xc   :  { %v285_v8 = vpop.eup %284  ;;  %v86_v39 = vmul.f32 %v85_v33, %v412_v30  ;;  %v87_v42 = vmul.f32 %v85_v33, %v417_v35 }
   0xd   :  { %276 = vpush %v285_v8  ;;  %v88_v46 = vmul.f32 %v85_v33, %v422_v38  ;;  %v89_v49 = vmul.f32 %v85_v33, %v425_v41  ;;  %v100_v56 = vmul.f32 1.442695, %v90_v53  ;;  %v102_v57 = vmul.f32 1.442695, %v91_v55 }
   0xe   :  { %283 = vset.pattern.permute.xlu1 %v323_v9  ;;  %282 = vset.pattern.permute.xlu0 %v323_v9  ;;  %v92_v47 = vmul.f32 1.442695, %v86_v39  ;;  %v94_v50 = vmul.f32 1.442695, %v87_v42 }
   0xf   :  { %207 = vperm.xlu1 %283, %v149_v5   ;;  %203 = vperm.xlu0 %282, %v148_v2   ;;  %v96_v52 = vmul.f32 1.442695, %v88_v46  ;;  %v98_v54 = vmul.f32 1.442695, %v89_v49 }
  0x10   :  { %286 = vpow2.f32 %v92_v47 }
  0x11   :  { %288 = vpow2.f32 %v94_v50 }
  0x12   :  { %290 = vpow2.f32 %v96_v52 }
  0x13   :  { %211 = vperm.xlu1 %283, %v150_v1   ;;  %215 = vperm.xlu0 %282, %v151_v4   ;;  %292 = vpow2.f32 %v98_v54 }
  0x14   :  { %294 = vpow2.f32 %v100_v56 }
  0x15   :  { %296 = vpow2.f32 %v102_v57 }
  0x17   :  { %219 = vperm.xlu1 %283, %v152_v7   ;;  %223 = vperm.xlu0 %282, %v153_v6  }
  0x1a   :  { %v287_v58 = vpop.eup %286 }
  0x1b   :  { %v289_v59 = vpop.eup %288  ;;  %v105_v60 = vmul.f32 %v287_v58, %v373_v3 }
  0x1c   :  { %v291_v61 = vpop.eup %290  ;;  %v106_v62 = vmul.f32 %v289_v59, %v373_v3 }
  0x1d   :  { %v293_v63 = vpop.eup %292  ;;  %v107_v0 = vmul.f32 %v291_v61, %v373_v3  ;;  %v111_v1 = vadd.f32 1.0, %v105_v60 }
  0x1e   :  { %v295_v2 = vpop.eup %294  ;;  %v108_v4 = vmul.f32 %v293_v63, %v373_v3  ;;  %v112_v5 = vadd.f32 1.0, %v106_v62 }
  0x1f   :  { %v297_v6 = vpop.eup %296  ;;  %v113_v7 = vadd.f32 1.0, %v107_v0  ;;  %298 = vlog2.f32 %v111_v1  ;;  %v109_v8 = vmul.f32 %v295_v2, %v373_v3 }
  0x20   :  { %v114_v9 = vadd.f32 1.0, %v108_v4  ;;  %v110_v10 = vmul.f32 %v297_v6, %v373_v3  ;;  %300 = vlog2.f32 %v112_v5 }
  0x21   :  { %302 = vlog2.f32 %v113_v7  ;;  %v115_v11 = vadd.f32 1.0, %v109_v8 }
  0x22   :  { %v116_v12 = vadd.f32 1.0, %v110_v10  ;;  %304 = vlog2.f32 %v114_v9 }
  0x23   :  { %306 = vlog2.f32 %v115_v11 }
  0x24   :  { %308 = vlog2.f32 %v116_v12 }
  0x29   :  { %v299_v13 = vpop.eup %298 }
  0x2a   :  { %v301_v14 = vpop.eup %300  ;;  %v118_v15 = vmul.f32 0.6931472, %v299_v13 }
  0x2b   :  { %v303_v16 = vpop.eup %302  ;;  %v120_v18 = vmul.f32 0.6931472, %v301_v14 }
  0x2c   :  { %v305_v19 = vpop.eup %304  ;;  %v122_v20 = vmul.f32 0.6931472, %v303_v16 }
  0x2d   :  { %v307_v22 = vpop.eup %306  ;;  %v124_v23 = vmul.f32 0.6931472, %v305_v19 }
  0x2e   :  { %v309_v24 = vpop.eup %308  ;;  %v126_v29 = vmul.f32 0.6931472, %v307_v22 }
  0x2f   :  { %v128_v33 = vmul.f32 0.6931472, %v309_v24 }
  0x3e   :  { %s277_s6 = spop %276 }
  0x3f   :  { %s83_s11 = smul.f32 -1.0, %s277_s6 }
  0x41   :  { %v129_v17 = vstv %s83_s11 }
  0x42   :  { %v130_v21 = vmul.f32 %v129_v17, %v118_v15  ;;  %v131_v3 = vmul.f32 %v129_v17, %v120_v18  ;;  %v132_v27 = vmul.f32 %v129_v17, %v122_v20  ;;  %v133_v32 = vmul.f32 %v129_v17, %v124_v23 }
  0x43   :  { %v134_v39 = vmul.f32 %v129_v17, %v126_v29  ;;  %v135_v42 = vmul.f32 %v129_v17, %v128_v33 }
  0x44   :  { %v136_v28 = vmul.f32 1.442695, %v130_v21  ;;  %v138_v31 = vmul.f32 1.442695, %v131_v3  ;;  %v140_v37 = vmul.f32 1.442695, %v132_v27 }
  0x45   :  { %v142_v40 = vmul.f32 1.442695, %v133_v32  ;;  %v144_v45 = vmul.f32 1.442695, %v134_v39  ;;  %v146_v46 = vmul.f32 1.442695, %v135_v42 }
  0x46   :  { %310 = vpow2.f32 %v136_v28 }
  0x47   :  { %312 = vpow2.f32 %v138_v31 }
  0x48   :  { %314 = vpow2.f32 %v140_v37 }
  0x49   :  { %316 = vpow2.f32 %v142_v40 }
  0x4a   :  { %318 = vpow2.f32 %v144_v45 }
  0x4b   :  { %320 = vpow2.f32 %v146_v46 }
  0x50   :  { %v311_v57 = vpop.eup %310 }
  0x51   :  { %v313_v62 = vpop.eup %312 }
  0x52   :  { %v315_v8 = vpop.eup %314 }
  0x53   :  { %v317_v13 = vpop.eup %316 }
  0x54   :  { %v319_v20 = vpop.eup %318 }
  0x55   :  { %v321_v24 = vpop.eup %320 }
  0x81   :  { %v167_v25 = vpop.permute.xlu1 %166  ;;  %v157_v26 = vpop.permute.xlu0 %156 }
  0x82   :  { %v184_v47 = vsub.f32 %v412_v30, %v157_v26  ;;  %v186_v55 = vsub.f32 %v422_v38, %v167_v25 }
  0x84   :  { %v190_v58 = vmax.f32 %v184_v47, 0.0  ;;  %v192_v4 = vmax.f32 %v186_v55, 0.0 }
  0x85   :  { %v172_v34 = vpop.permute.xlu1 %171  ;;  %v162_v36 = vpop.permute.xlu0 %161 }
  0x86   :  { %v185_v49 = vsub.f32 %v417_v35, %v162_v36  ;;  %v187_v56 = vsub.f32 %v425_v41, %v172_v34 }
  0x88   :  { %v191_v59 = vmax.f32 %v185_v49, 0.0  ;;  %v193_v5 = vmax.f32 %v187_v56, 0.0 }
  0x89   :  { %v182_v43 = vpop.permute.xlu1 %181  ;;  %v177_v44 = vpop.permute.xlu0 %176 }
  0x8a   :  { %v189_v6 = vsub.f32 %v438_v51, %v182_v43  ;;  %v188_v7 = vsub.f32 %v435_v48, %v177_v44 }
  0x8c   :  { %v195_v18 = vmax.f32 %v189_v6, 0.0  ;;  %v194_v19 = vmax.f32 %v188_v7, 0.0 }
  0x8e   :  { %v208_v50 = vpop.permute.xlu1 %207  ;;  %v204_v52 = vpop.permute.xlu0 %203 }
  0x8f   :  { %v227_v53 = vsub.f32 %v417_v35, %v208_v50  ;;  %v226_v54 = vsub.f32 %v412_v30, %v204_v52 }
  0x91   :  { %v233_v60 = vmax.f32 %v227_v53, 0.0  ;;  %v232_v61 = vmax.f32 %v226_v54, 0.0 }
  0x92   :  { %v212_v63 = vpop.permute.xlu1 %211  ;;  %v216_v0 = vpop.permute.xlu0 %215 }
  0x93   :  { %v239_v1 = vadd.f32 %v233_v60, %v191_v59  ;;  %v238_v2 = vadd.f32 %v232_v61, %v190_v58  ;;  %v228_v35 = vsub.f32 %v422_v38, %v212_v63  ;;  %v229_v30 = vsub.f32 %v425_v41, %v216_v0 }
  0x95   :  { %v245_v9 = vadd.f32 %v313_v62, %v239_v1  ;;  %v244_v10 = vadd.f32 %v311_v57, %v238_v2  ;;  %v234_v11 = vmax.f32 %v228_v35, 0.0  ;;  %v235_v12 = vmax.f32 %v229_v30, 0.0 }
  0x96   :  { %v220_v14 = vpop.permute.xlu1 %219  ;;  %v224_v15 = vpop.permute.xlu0 %223 }
  0x97   :  { %251 = vst [vmem:[%s485_s7 + $0x8] sm:$0xff] %v245_v9  ;;  %250 = vst [vmem:[%s485_s7] sm:$0xff] %v244_v10  ;;  %v240_v38 = vadd.f32 %v234_v11, %v192_v4  ;;  %v241_v41 = vadd.f32 %v235_v12, %v193_v5  ;;  %v230_v16 = vsub.f32 %v435_v48, %v220_v14 }
  0x98   :  { %v231_v17 = vsub.f32 %v438_v51, %v224_v15 }
  0x99   :  { %v246_v21 = vadd.f32 %v315_v8, %v240_v38  ;;  %v247_v22 = vadd.f32 %v317_v13, %v241_v41  ;;  %v236_v3 = vmax.f32 %v230_v16, 0.0 }
  0x9a   :  { %v237_v23 = vmax.f32 %v231_v17, 0.0 }
  0x9b   :  { %252 = vst [vmem:[%s485_s7 + $0x10] sm:$0xff] %v246_v21  ;;  %253 = vst [vmem:[%s485_s7 + $0x18] sm:$0xff] %v247_v22  ;;  %v242_v25 = vadd.f32 %v236_v3, %v194_v19 }
  0x9c   :  { %v243_v48 = vadd.f32 %v237_v23, %v195_v18 }
  0x9d   :  { %v248_v26 = vadd.f32 %v319_v20, %v242_v25 }
  0x9e   :  { %v249_v51 = vadd.f32 %v321_v24, %v243_v48 }
  0x9f   :  { %254 = vst [vmem:[%s485_s7 + $0x20] sm:$0xff] %v248_v26 }
  0xa0   :  { %255 = vst [vmem:[%s485_s7 + $0x28] sm:$0xff] %v249_v51 }

</bundles_post_ra>
